<compile_context>
chip_gen: v7x
topology: tpu7x:2x2x1
jax: 0.10.0
libtpu: 0.0.40
codegen_flags: <defaults>
</compile_context>

<pallas_src>
import functools

import jax
import jax.numpy as jnp
from jax.experimental import pallas as pl
from jax.experimental.pallas import tpu as pltpu


def _round_up(a, b):
    return ((a + b - 1) // b) * b


def _tpu_params():
    """(vmem_capacity_bytes, multi_tensorcore) with safe fallbacks."""
    kind = ""
    try:
        kind = jax.devices()[0].device_kind.lower()
    except Exception:
        pass
    multi_tc = "v7" in kind            # v7x: 2 TensorCores / chip
    try:
        cap = int(pltpu.get_tpu_info().vmem_capacity_bytes)
    except Exception:
        cap = (64 << 20) if multi_tc else (128 << 20)
    return cap, multi_tc


def _pick_tile(N, K, E, in_b, out_b, vmem_cap, multi_tc):
    """Largest sublane-aligned row tile that fits the per-call VMEM budget."""
    budget = int(0.70 * vmem_cap)
    fixed = K * E * in_b + E * 4                       # single-buffered w + bias

    def need(tm):
        # double-buffered input/output tiles + Mosaic-internal f32 accumulator
        return fixed + 2 * tm * K * in_b + 2 * tm * E * out_b + tm * E * 4

    tm = 8
    for cand in (1024, 512, 256, 128, 64, 32, 16, 8):
        if need(cand) <= budget:
            tm = cand
            break
    if multi_tc:
        # Keep >= 2 blocks (when N allows) so both v7x TensorCores get work.
        if N >= 16:
            tm = min(tm, _round_up(pl.cdiv(N, 2), 8))
        else:
            tm = min(tm, 8)
    else:
        # Single TensorCore: one block when the whole problem fits.
        tm = min(tm, _round_up(max(N, 1), 8))
    tm = max(tm, 8)
    return tm, need(tm)


def _patch_embed_kernel(p_ref, w_ref, b_ref, o_ref):
    # p_ref: (tm, K) patch rows; w_ref: (K, E); b_ref: (1, E) f32; o_ref: (tm, E).
    # f32 MXU accumulate, f32 bias add, downcast only at the store.
    acc = jnp.dot(p_ref[...], w_ref[...], preferred_element_type=jnp.float32)
    o_ref[...] = (acc + b_ref[...]).astype(o_ref.dtype)


def patch_embed_2d(x, weight, bias, patch_size, *, compute_dtype=jnp.bfloat16):
    """Equivalent of PatchEmbed2D.forward (norm_layer=None).

    x:      (B, C, H, W)
    weight: (E, C, ph, pw)   PyTorch Conv2d weight layout
    bias:   (E,)
    compute_dtype: dtype fed to the MXU.  bfloat16 (default) halves HBM/DMA
        bytes and uses the bf16-native MXU on v5e/v6e/v7x; accumulation, bias
        add and the output stay float32.  Pass jnp.float32 for exact f32
        semantics, or None to use x.dtype.
    returns (B, H//ph, W//pw, E)
    """
    if isinstance(patch_size, (tuple, list)):
        ph, pw = int(patch_size[0]), int(patch_size[1])
    else:
        ph = pw = int(patch_size)
    B, C, H, W = x.shape
    E = weight.shape[0]
    assert H % ph == 0 and W % pw == 0, "H/W must be divisible by patch_size"
    Hp, Wp = H // ph, W // pw
    out_dtype = x.dtype
    if compute_dtype is None:
        compute_dtype = x.dtype

    N = B * Hp * Wp            # number of patches (GEMM rows)
    K = C * ph * pw            # patch vector length (contraction dim)

    in_b = jnp.dtype(compute_dtype).itemsize
    out_b = jnp.dtype(out_dtype).itemsize

    vmem_cap, multi_tc = _tpu_params()
    tm, vmem_need = _pick_tile(N, K, E, in_b, out_b, vmem_cap, multi_tc)
    grid = (pl.cdiv(N, tm),)   # ragged last block handled by Pallas masking

    # --- glue: non-overlapping patches ordered (c, kh, kw) so the flattened
    # patch vector matches the flattened conv weight.  Cast BEFORE the
    # transpose so the relayout (if it materializes) moves compute-dtype bytes.
    xc = x.astype(compute_dtype)
    xp = xc.reshape(B, C, Hp, ph, Wp, pw)
    xp = jnp.transpose(xp, (0, 2, 4, 1, 3, 5))          # (B, Hp, Wp, C, ph, pw)
    patches = xp.reshape(N, K)                          # (N, K), no padding

    w2d = jnp.transpose(weight.reshape(E, K)).astype(compute_dtype)   # (K, E)
    b2d = bias.astype(jnp.float32).reshape(1, E)                      # (1, E)

    cost = pl.CostEstimate(
        flops=2 * N * K * E,
        transcendentals=0,
        bytes_accessed=N * K * in_b + K * E * in_b + E * 4 + N * E * out_b,
    )

    # Only raise the scoped-VMEM limit when the estimate exceeds the smallest
    # default (16 MiB on v5e); cap at ~78% of physical capacity (≈48 MiB v7x,
    # ≈100 MiB v5e/v6e) to leave headroom for Mosaic internal scratch.
    vmem_limit = None
    if vmem_need > (12 << 20):
        vmem_limit = int(min(max(2 * vmem_need, 32 << 20), int(0.78 * vmem_cap)))
        vmem_limit = max(vmem_limit, vmem_need)

    out = pl.pallas_call(
        _patch_embed_kernel,
        out_shape=jax.ShapeDtypeStruct((N, E), out_dtype),
        grid_spec=pltpu.PrefetchScalarGridSpec(
            num_scalar_prefetch=0,
            grid=grid,
            in_specs=[
                pl.BlockSpec((tm, K), lambda i: (i, 0)),
                # Constant blocks: single-buffered (double-buffering is waste).
                pl.BlockSpec((K, E), lambda i: (0, 0),
                             pipeline_mode=pl.Buffered(1)),
                pl.BlockSpec((1, E), lambda i: (0, 0),
                             pipeline_mode=pl.Buffered(1)),
            ],
            out_specs=pl.BlockSpec((tm, E), lambda i: (i, 0)),
        ),
        compiler_params=pltpu.CompilerParams(
            dimension_semantics=("parallel",),
            allow_input_fusion=[True, False, False],
            vmem_limit_bytes=vmem_limit,
        ),
        cost_estimate=cost,
    )(patches, w2d, b2d)

    # (N, E) -> (B, Hp, Wp, E): leading-dim split only, no relayout.
    return out.reshape(B, Hp, Wp, E)


if __name__ == "__main__":
    key = jax.random.PRNGKey(0)
    k_x, k_w, k_b = jax.random.split(key, 3)

    B, C, H, W = 2, 4, 16, 16
    patch_size = 4
    embed_dim = 32

    x = jax.random.normal(k_x, (B, C, H, W), dtype=jnp.float32)
    # Deterministic Conv2d-style init (uniform in +-1/sqrt(fan_in)).
    fan_in = C * patch_size * patch_size
    bound = 1.0 / (fan_in ** 0.5)
    weight = jax.random.uniform(
        k_w, (embed_dim, C, patch_size, patch_size),
        minval=-bound, maxval=bound, dtype=jnp.float32)
    bias = jax.random.uniform(
        k_b, (embed_dim,), minval=-bound, maxval=bound, dtype=jnp.float32)

    # Reference: XLA conv (same semantics as torch Conv2d NCHW) + permute.
    ref = jax.lax.conv_general_dilated(
        x, weight, window_strides=(patch_size, patch_size), padding="VALID",
        dimension_numbers=("NCHW", "OIHW", "NCHW"))
    ref = jnp.transpose(ref, (0, 2, 3, 1)) + bias.reshape(1, 1, 1, -1)

    pe_f32 = jax.jit(functools.partial(
        patch_embed_2d, patch_size=patch_size, compute_dtype=jnp.float32))
    pe_bf16 = jax.jit(functools.partial(patch_embed_2d, patch_size=patch_size))

    # Exact (f32) path — matches the PyTorch module semantics bit-for-policy.
    out_f32 = jax.block_until_ready(pe_f32(x, weight, bias))
    assert out_f32.shape == (B, H // patch_size, W // patch_size, embed_dim)
    assert out_f32.dtype == x.dtype
    assert jnp.allclose(out_f32, ref, atol=1e-4, rtol=1e-4)

    # Default path: bf16 MXU feed, f32 accumulate/bias, f32 output.
    out_bf16 = jax.block_until_ready(pe_bf16(x, weight, bias))
    assert out_bf16.shape == out_f32.shape
    assert out_bf16.dtype == x.dtype
    assert jnp.allclose(out_bf16, ref, atol=5e-2, rtol=5e-2)

    print("KERNEL_OK")
</pallas_src>

<mosaic_0001>
module attributes {stable_mosaic.version = 11 : i64} {
  func.func @_patch_embed_kernel(%arg0: i32, %arg1: memref<32x64xf32, #tpu.memory_space<vmem>>, %arg2: memref<64x32xf32, #tpu.memory_space<vmem>>, %arg3: memref<1x32xf32, #tpu.memory_space<vmem>>, %arg4: memref<32x32xf32, #tpu.memory_space<vmem>>) attributes {dimension_semantics = [#tpu.dimension_semantics<parallel>], iteration_bounds = array<i64: 1>, scalar_prefetch = 0 : i64, scratch_operands = 0 : i64, tpu.core_type = #tpu.core_type<tc>, window_params = [{transform_indices = @transform_0, window_bounds = array<i64: 32, 64>}, {pipeline_mode = #tpu.pipeline_mode<synchronous>, transform_indices = @transform_1, window_bounds = array<i64: 64, 32>}, {pipeline_mode = #tpu.pipeline_mode<synchronous>, transform_indices = @transform_2, window_bounds = array<i64: 1, 32>}, {transform_indices = @transform_3, window_bounds = array<i64: 32, 32>}]} {
    %c0 = arith.constant 0 : index
    %c0_0 = arith.constant 0 : index
    %0 = vector.load %arg1[%c0, %c0_0] : memref<32x64xf32, #tpu.memory_space<vmem>>, vector<32x64xf32>
    %c0_1 = arith.constant 0 : index
    %c0_2 = arith.constant 0 : index
    %1 = vector.load %arg2[%c0_1, %c0_2] : memref<64x32xf32, #tpu.memory_space<vmem>>, vector<64x32xf32>
    %cst = arith.constant dense<0.000000e+00> : vector<32x32xf32>
    %2 = tpu.matmul %0, %1, %cst {dimension_numbers = #tpu.dot_dimension_numbers<[1], [0], [0], [1], [0, 0, 1, 1], [], []>} : vector<32x64xf32>, vector<64x32xf32>, vector<32x32xf32> -> vector<32x32xf32>
    %c0_3 = arith.constant 0 : index
    %c0_4 = arith.constant 0 : index
    %3 = vector.load %arg3[%c0_3, %c0_4] : memref<1x32xf32, #tpu.memory_space<vmem>>, vector<1x32xf32>
    %4 = vector.broadcast %3 : vector<1x32xf32> to vector<32x32xf32>
    %5 = arith.addf %2, %4 : vector<32x32xf32>
    %c0_5 = arith.constant 0 : index
    %c0_6 = arith.constant 0 : index
    %6 = vector.load %arg4[%c0_5, %c0_6] : memref<32x32xf32, #tpu.memory_space<vmem>>, vector<32x32xf32>
    tpu.vector_store %arg4[%c0_5, %c0_6], %5 {strides = array<i32>} : memref<32x32xf32, #tpu.memory_space<vmem>>, vector<32x32xf32>,
    return
  }
  func.func @transform_0(%arg0: i32) -> (i32, i32) {
    %c0_i32 = arith.constant 0 : i32
    %c0_i32_0 = arith.constant 0 : i32
    return %arg0, %c0_i32 : i32, i32
  }
  func.func @transform_1(%arg0: i32) -> (i32, i32) {
    %c0_i32 = arith.constant 0 : i32
    %c0_i32_0 = arith.constant 0 : i32
    %c0_i32_1 = arith.constant 0 : i32
    return %c0_i32, %c0_i32_0 : i32, i32
  }
  func.func @transform_2(%arg0: i32) -> (i32, i32) {
    %c0_i32 = arith.constant 0 : i32
    %c0_i32_0 = arith.constant 0 : i32
    %c0_i32_1 = arith.constant 0 : i32
    return %c0_i32, %c0_i32_0 : i32, i32
  }
  func.func @transform_3(%arg0: i32) -> (i32, i32) {
    %c0_i32 = arith.constant 0 : i32
    %c0_i32_0 = arith.constant 0 : i32
    return %arg0, %c0_i32 : i32, i32
  }
}

</mosaic_0001>

<bundles_post_ra>
// kernel: patch_embed_2d.1
= control target key start
LH: loop header
LB: loop body
LE: loop exit
PB: predicated region body
PF: predicated region fallthrough
CT: control target
= control target key end

     0   :  { %vm34_vm0 = vcmask 523264   ;;  %s321_s0 = inlined_call_operand.vmem [shape: f32[32,64], index: 0, kind: input, shape index: {}]   ;;  %s322_s1 = inlined_call_operand.vmem [shape: f32[64,32], index: 1, kind: input, shape index: {}]   ;;  %s323_s2 = inlined_call_operand.vmem [shape: f32[1,32], index: 2, kind: input, shape index: {}]   ;;  %s324_s3 = inlined_call_operand.hbm [shape: f32[32,32], index: 3, kind: output, shape index: {}]  }
   0x1   :  { %v19_v0 = vld [vmem:[%s322_s1] sm:$0xff]  ;;  %v20_v1 = vld [vmem:[%s322_s1 + $0x8] sm:$0xff]  ;;  %v21_v2 = vld [vmem:[%s322_s1 + $0x10] sm:$0xff] }
   0x2   :  { %v192_v3 = vpack.c.bf16 %v20_v1, %v19_v0  ;;  %v22_v4 = vld [vmem:[%s322_s1 + $0x18] sm:$0xff]  ;;  %v23_v6 = vld [vmem:[%s322_s1 + $0x20] sm:$0xff]  ;;  %v24_v7 = vld [vmem:[%s322_s1 + $0x28] sm:$0xff] }
   0x3   :  { %v196_v5 = vpack.c.bf16 %v22_v4, %v21_v2  ;;  %v15_v8 = vld [vmem:[%s321_s0] sm:$0xff]  ;;  %v17_v9 = vld [vmem:[%s321_s0 + $0x10] sm:$0xff] }
   0x4   :  { %193 = vmatprep.subr.bf16.mxu0 %v192_v3  ;;  %208 = vmatprep.subr.bf16.mxu1 %v192_v3 }
   0x5   :  { %195 = vmatpush3.bf16.msra.mxu0 %v192_v3  ;;  %212 = vmatpush3.bf16.msra.mxu1 %v192_v3 }
   0x6   :  { %8 = vsyncpa [#allocation3], 0  ;;  %197 = vmatprep.subr.bf16.mxu0 %v196_v5  ;;  %209 = vmatprep.subr.bf16.mxu1 %v196_v5  ;;  %v200_v10 = vpack.c.bf16 %v24_v7, %v23_v6  ;;  %v25_v11 = vld [vmem:[%s322_s1 + $0x30] sm:$0xff]  ;;  %v26_v12 = vld [vmem:[%s322_s1 + $0x38] sm:$0xff]  ;;  %s243_s10 = smov [#allocation2]   ;;  %vm132_vm1 = vcmask 261120  }
   0x7   :  { %186 = vmatprep.mubr.msk.f32.mxu0 %vm34_vm0, %v15_v8  ;;  %189 = vmatprep.mubr.msk.f32.mxu1 %vm34_vm0, %v17_v9  ;;  %v204_v13 = vpack.c.bf16 %v26_v12, %v25_v11  ;;  %v16_v14 = vld [vmem:[%s321_s0 + $0x8] sm:$0xff]  ;;  %v18_v15 = vld [vmem:[%s321_s0 + $0x18] sm:$0xff]  ;;  %v153_v16 = vld [vmem:[%s323_s2] ss:$0 sm:$0xff]  ;;  %s142_s11 = sshll.u32 %s243_s10, 4  ;;  %s143_s11 = int_to_ptr.vmem [resolvable:$true] %s142_s11 }
   0x8   :  { %s219_s0 = scalar_lea.vmem %s143_s11, 512  ;;  %p224_p1 = scmp.lt.s32.totalorder %s143_s11, %s143_s11 }
   0x9   :  { %199 = vmatpush3.bf16.msra.mxu0 %v196_v5  ;;  %213 = vmatpush3.bf16.msra.mxu1 %v196_v5  ;;  %p220_p0 = scmp.ne.s32.totalorder %s143_s11, %s219_s0  ;;  %p225_p2 = scmp.lt.s32.totalorder %s219_s0, %s219_s0 }
   0xa   :  { %201 = vmatprep.subr.bf16.mxu0 %v200_v10  ;;  %210 = vmatprep.subr.bf16.mxu1 %v200_v10 }
   0xb   :  { %p226_p3 = por %p225_p2, %p224_p1 }
   0xd   :  { %203 = vmatpush3.bf16.msra.mxu0 %v200_v10  ;;  %214 = vmatpush3.bf16.msra.mxu1 %v200_v10  ;;  %p227_p4 = pnand %p226_p3, %p220_p0 }
   0xe   :  { %205 = vmatprep.subr.bf16.mxu0 %v204_v13  ;;  %211 = vmatprep.subr.bf16.mxu1 %v204_v13 }
  0x11   :  { %207 = vmatpush3.bf16.msra.mxu0 %v204_v13  ;;  %215 = vmatpush3.bf16.msra.mxu1 %v204_v13 }
  0x14   :  { %187 = vmatmul.mubr.msk.f32.vlgmr.msra.gmra.mrb[0].mxu0 %vm34_vm0, %v16_v14  ;;  %190 = vmatmul.mubr.msk.f32.vlgmr.msra.gmra.mrb[0].mxu1 %vm34_vm0, %v18_v15 }
  0xe7   :  { %v188_v17 = vpop.f32.mrb[0].mxu0  ;;  %v191_v18 = vpop.f32.mrb[0].mxu1 }
  0xe8   :  { %v119_v19 = vadd.f32 %v188_v17, %v153_v16  ;;  %v129_v20 = vadd.f32 %v191_v18, %v153_v16  ;;  %v113_v21 = vpop.f32.mrb[1].mxu0  ;;  %v123_v22 = vpop.f32.mrb[1].mxu1 }
  0xe9   :  { %v114_v23 = vadd.f32 %v153_v16, %v113_v21  ;;  %v124_v24 = vadd.f32 %v153_v16, %v123_v22 }
  0xea   :  { %134 = vst.msk [vmem:[#allocation2 + $0x8] sm:$0xff] %vm132_vm1, %v119_v19  ;;  %136 = vst.msk [vmem:[#allocation2 + $0x18] sm:$0xff] %vm132_vm1, %v129_v20 }
  0xeb   :  { %133 = vst.msk [vmem:[#allocation2] sm:$0xff] %vm132_vm1, %v114_v23  ;;  %135 = vst.msk [vmem:[#allocation2 + $0x10] sm:$0xff] %vm132_vm1, %v124_v24 }
  0xec   :  { %230 = shalt.err (!%p227_p4)
}
  0xed   :  { %s231_s13 = scalar_lea.hbm %s324_s3, 512 }
  0xee   :  { %p232_p5 = scmp.ne.s32.totalorder %s324_s3, %s231_s13  ;;  %p235_p6 = scmp.lt.u32.totalorder %s231_s13, %s324_s3 }
  0xf0   :  { %p237_p7 = pnand %p235_p6, %p232_p5 }
  0xf2   :  { %240 = shalt.err (!%p237_p7)
}
  0xf3   :  { %s244_s18 = smov 128   ;;  %s245_s19 = smov 8  }
  0xf4   :  { %148 = dma.vmem_to_hbm [thread:$0]  %s143_s11, 512, %s324_s3, [#allocation3], %s244_s18, %s244_s18, %s245_s19  }
  0xf5   :  { %241 = dma.done.wait [#allocation3], 512  }
  0xf6   :  { %242 = vsyncadd [#allocation3], 4294966784 }
  0xf7   :  { %152 = vsyncpa [#allocation3], 1 }

</bundles_post_ra>
